<compile_context>
chip_gen: v5e
topology: v5e:2x2
jax: 0.10.0
libtpu: 0.0.40
codegen_flags: <defaults>
</compile_context>

<pallas_src>
import math

import jax
import jax.numpy as jnp
import numpy as np
from jax import lax
from jax.experimental import pallas as pl
from jax.experimental.pallas import tpu as pltpu


# ----------------------------- in-kernel helpers -----------------------------

def _layernorm(x, w, b, eps=1e-5):
    mu = jnp.mean(x, axis=-1, keepdims=True)
    xc = x - mu
    var = jnp.mean(xc * xc, axis=-1, keepdims=True)
    return xc * lax.rsqrt(var + eps) * w + b


def _gelu_exact(x):
    # matches torch.nn.GELU() default (exact erf formulation)
    return 0.5 * x * (1.0 + lax.erf(x * (1.0 / math.sqrt(2.0))))


# ------------------------- kernel A: LN1 + QKV projection ---------------------

def ln_qkv_kernel(x_ref, ln1_w, ln1_b, w_qkv, b_qkv, qkv_ref):
    xn = _layernorm(x_ref[...], ln1_w[...], ln1_b[...]).astype(jnp.bfloat16)
    qkv = jnp.dot(xn, w_qkv[...], preferred_element_type=jnp.float32) + b_qkv[...]
    qkv_ref[...] = qkv.astype(qkv_ref.dtype)


# --------- kernel B: flash attention + fused output projection + residual -----

def flash_attn_kernel(x_ref, q_ref, k_ref, v_ref, wproj_ref, bproj_ref,
                      o_ref, m_sc, l_sc, acc_sc):
    qi = pl.program_id(1)
    ki = pl.program_id(2)

    blk_q, C = q_ref.shape
    blk_k = k_ref.shape[0]
    H = m_sc.shape[0]
    D = C // H
    scale = 1.0 / math.sqrt(D)

    # reset per-head online-softmax state at the start of the KV loop for this (b, qi)
    @pl.when(ki == 0)
    def _init():
        m_sc[...] = jnp.full_like(m_sc, -1e30)
        l_sc[...] = jnp.zeros_like(l_sc)
        acc_sc[...] = jnp.zeros_like(acc_sc)

    def online_step(masked):
        # fold 1/sqrt(D) into q once per tile (bf16; cheaper than scaling the score matrix)
        q = q_ref[...] * scale                              # (blk_q, C) bf16, heads packed in lanes
        k = k_ref[...]                                      # (blk_k, C) bf16
        v = v_ref[...]                                      # (blk_k, C) bf16
        if masked:
            # diagonal tile (qi == ki): local offsets are enough for the causal predicate
            rows = lax.broadcasted_iota(jnp.int32, (blk_q, blk_k), 0)
            cols = lax.broadcasted_iota(jnp.int32, (blk_q, blk_k), 1)
            keep = cols <= rows
        for h in range(H):                                  # static unroll over heads
            sl = slice(h * D, (h + 1) * D)
            s = lax.dot_general(q[:, sl], k[:, sl], (((1,), (1,)), ((), ())),
                                preferred_element_type=jnp.float32)   # (blk_q, blk_k)
            if masked:
                s = jnp.where(keep, s, -1e30)               # finite mask: no -inf/NaN hazards
            m_prev = m_sc[h]
            m_new = jnp.maximum(m_prev, jnp.max(s, axis=-1, keepdims=True))
            alpha = jnp.exp(m_prev - m_new)
            p = jnp.exp(s - m_new)
            l_sc[h] = alpha * l_sc[h] + jnp.sum(p, axis=-1, keepdims=True)
            acc_sc[h] = alpha * acc_sc[h] + jnp.dot(
                p.astype(jnp.bfloat16), v[:, sl], preferred_element_type=jnp.float32)
            m_sc[h] = m_new

    # strictly-past KV tile: unmasked fast path (majority of tiles)
    @pl.when(ki < qi)
    def _past():
        online_step(masked=False)

    # diagonal KV tile: masked path, then finalize with ONE lane-dense K=C projection
    @pl.when(ki == qi)
    def _diag():
        online_step(masked=True)
        ys = [acc_sc[h] * pl.reciprocal(l_sc[h], approx=True) for h in range(H)]
        y = jnp.concatenate(ys, axis=-1).astype(jnp.bfloat16)          # (blk_q, C)
        o_ref[...] = x_ref[...] + bproj_ref[...] + jnp.dot(
            y, wproj_ref[...], preferred_element_type=jnp.float32)

    # ki > qi: causal-future tile -> no compute; k/v DMA also skipped via clamped index_map.


# ----------------------- kernel C: LN2 + MLP(GELU) + residual ------------------

def mlp_kernel(x_ref, ln2_w, ln2_b, w_fc, b_fc, w_fc2, b_fc2, o_ref):
    x = x_ref[...]
    xn = _layernorm(x, ln2_w[...], ln2_b[...]).astype(jnp.bfloat16)
    hdn = jnp.dot(xn, w_fc[...], preferred_element_type=jnp.float32) + b_fc[...]
    hdn = _gelu_exact(hdn).astype(jnp.bfloat16)
    o_ref[...] = x + jnp.dot(hdn, w_fc2[...],
                             preferred_element_type=jnp.float32) + b_fc2[...]


# ------------------------------ Block forward wrapper --------------------------

def block_forward(x, p, n_head, blk=128):
    B, T, C = x.shape
    H = n_head
    assert C % H == 0
    D = C // H
    blk = min(blk, T)
    assert T % blk == 0 and blk % 8 == 0 and C % 128 == 0
    nt = T // blk
    Cm = p["w_fc"].shape[1]          # MLP hidden width (4*C)
    f32 = jnp.float32

    # ---- kernel A: LN1 + fused QKV projection ----
    qkv = pl.pallas_call(
        ln_qkv_kernel,
        out_shape=jax.ShapeDtypeStruct((B, T, 3 * C), jnp.bfloat16),
        grid=(B, nt),
        in_specs=[
            pl.BlockSpec((None, blk, C), lambda b, t: (b, t, 0)),
            pl.BlockSpec((1, C), lambda b, t: (0, 0)),
            pl.BlockSpec((1, C), lambda b, t: (0, 0)),
            pl.BlockSpec((C, 3 * C), lambda b, t: (0, 0)),
            pl.BlockSpec((1, 3 * C), lambda b, t: (0, 0)),
        ],
        out_specs=pl.BlockSpec((None, blk, 3 * C), lambda b, t: (b, t, 0)),
        compiler_params=pltpu.CompilerParams(
            dimension_semantics=("parallel", "parallel")),
    )(x, p["ln1_w"], p["ln1_b"], p["w_qkv"], p["b_qkv"])

    # ---- kernel B: flash attention + fused c_proj + residual ----
    # q/k/v index directly into the flat (B, T, 3C) qkv buffer (lane blocks 0/1/2);
    # the k/v row index is clamped to min(ki, qi) so causal-future tiles issue no new DMA.
    x_attn = pl.pallas_call(
        flash_attn_kernel,
        out_shape=jax.ShapeDtypeStruct((B, T, C), f32),
        grid=(B, nt, nt),
        in_specs=[
            pl.BlockSpec((None, blk, C), lambda b, qi, ki: (b, qi, 0)),                   # residual x
            pl.BlockSpec((None, blk, C), lambda b, qi, ki: (b, qi, 0)),                   # q  lanes [0:C)
            pl.BlockSpec((None, blk, C),
                         lambda b, qi, ki: (b, jnp.minimum(ki, qi), 1)),                  # k  lanes [C:2C)
            pl.BlockSpec((None, blk, C),
                         lambda b, qi, ki: (b, jnp.minimum(ki, qi), 2)),                  # v  lanes [2C:3C)
            pl.BlockSpec((C, C), lambda b, qi, ki: (0, 0)),                               # w_proj
            pl.BlockSpec((1, C), lambda b, qi, ki: (0, 0)),                               # b_proj
        ],
        out_specs=pl.BlockSpec((None, blk, C), lambda b, qi, ki: (b, qi, 0)),
        scratch_shapes=[
            pltpu.VMEM((H, blk, 1), f32),   # per-head running max
            pltpu.VMEM((H, blk, 1), f32),   # per-head running denom
            pltpu.VMEM((H, blk, D), f32),   # per-head running numerator
        ],
        compiler_params=pltpu.CompilerParams(
            dimension_semantics=("parallel", "parallel", "arbitrary")),
    )(x, qkv, qkv, qkv, p["w_proj"], p["b_proj"])

    # ---- kernel C: LN2 + MLP + residual ----
    out = pl.pallas_call(
        mlp_kernel,
        out_shape=jax.ShapeDtypeStruct((B, T, C), f32),
        grid=(B, nt),
        in_specs=[
            pl.BlockSpec((None, blk, C), lambda b, t: (b, t, 0)),
            pl.BlockSpec((1, C), lambda b, t: (0, 0)),
            pl.BlockSpec((1, C), lambda b, t: (0, 0)),
            pl.BlockSpec((C, Cm), lambda b, t: (0, 0)),
            pl.BlockSpec((1, Cm), lambda b, t: (0, 0)),
            pl.BlockSpec((Cm, C), lambda b, t: (0, 0)),
            pl.BlockSpec((1, C), lambda b, t: (0, 0)),
        ],
        out_specs=pl.BlockSpec((None, blk, C), lambda b, t: (b, t, 0)),
        compiler_params=pltpu.CompilerParams(
            dimension_semantics=("parallel", "parallel")),
    )(x_attn, p["ln2_w"], p["ln2_b"], p["w_fc"], p["b_fc"], p["w_fc2"], p["b_fc2"])

    return out


# ------------------------------ parameter init --------------------------------

def init_params(key, C):
    f32, bf16 = jnp.float32, jnp.bfloat16
    Cm = 4 * C
    std = 0.02
    ks = jax.random.split(key, 12)
    return dict(
        ln1_w=1.0 + 0.1 * jax.random.normal(ks[0], (1, C), f32),
        ln1_b=0.1 * jax.random.normal(ks[1], (1, C), f32),
        w_qkv=(std * jax.random.normal(ks[2], (C, 3 * C), f32)).astype(bf16),
        b_qkv=std * jax.random.normal(ks[3], (1, 3 * C), f32),
        w_proj=(std * jax.random.normal(ks[4], (C, C), f32)).astype(bf16),
        b_proj=std * jax.random.normal(ks[5], (1, C), f32),
        ln2_w=1.0 + 0.1 * jax.random.normal(ks[6], (1, C), f32),
        ln2_b=0.1 * jax.random.normal(ks[7], (1, C), f32),
        w_fc=(std * jax.random.normal(ks[8], (C, Cm), f32)).astype(bf16),
        b_fc=std * jax.random.normal(ks[9], (1, Cm), f32),
        w_fc2=(std * jax.random.normal(ks[10], (Cm, C), f32)).astype(bf16),
        b_fc2=std * jax.random.normal(ks[11], (1, C), f32),
    )


# ---------------------------- pure-JAX reference -------------------------------

def reference_block(x, p, n_head):
    B, T, C = x.shape
    H, D = n_head, C // n_head

    def ln(v, w, b):
        mu = v.mean(-1, keepdims=True)
        var = ((v - mu) ** 2).mean(-1, keepdims=True)
        return (v - mu) * lax.rsqrt(var + 1e-5) * w + b

    w_qkv = p["w_qkv"].astype(jnp.float32)
    w_proj = p["w_proj"].astype(jnp.float32)
    w_fc = p["w_fc"].astype(jnp.float32)
    w_fc2 = p["w_fc2"].astype(jnp.float32)

    xn = ln(x, p["ln1_w"][0], p["ln1_b"][0])
    qkv = xn @ w_qkv + p["b_qkv"][0]
    q, k, v = jnp.split(qkv, 3, axis=-1)
    q = q.reshape(B, T, H, D).transpose(0, 2, 1, 3)
    k = k.reshape(B, T, H, D).transpose(0, 2, 1, 3)
    v = v.reshape(B, T, H, D).transpose(0, 2, 1, 3)
    att = jnp.einsum("bhqd,bhkd->bhqk", q, k) / math.sqrt(D)
    mask = jnp.tril(jnp.ones((T, T), bool))
    att = jnp.where(mask, att, -jnp.inf)
    att = jax.nn.softmax(att, axis=-1)
    y = jnp.einsum("bhqk,bhkd->bhqd", att, v)
    y = y.transpose(0, 2, 1, 3).reshape(B, T, C)
    x = x + y @ w_proj + p["b_proj"][0]

    xn2 = ln(x, p["ln2_w"][0], p["ln2_b"][0])
    hdn = xn2 @ w_fc + p["b_fc"][0]
    hdn = 0.5 * hdn * (1.0 + lax.erf(hdn / math.sqrt(2.0)))
    return x + hdn @ w_fc2 + p["b_fc2"][0]


# ------------------------------------ main -------------------------------------

if __name__ == "__main__":
    # small but TPU-aligned shapes: 2 query/key tiles of 128, lane-dense C=128, H=4 (D=32)
    B, T, C, H = 2, 256, 128, 4

    key = jax.random.PRNGKey(0)
    kx, kp = jax.random.split(key)
    params = init_params(kp, C)
    x = jax.random.normal(kx, (B, T, C), jnp.float32)

    y = block_forward(x, params, n_head=H, blk=128)
    y = jax.block_until_ready(y)
    assert y.shape == (B, T, C)

    ref = reference_block(x, params, H)
    # bf16 MXU inputs + approx reciprocal -> compare at bf16-level tolerance
    np.testing.assert_allclose(np.asarray(y), np.asarray(ref), rtol=2e-2, atol=2e-2)

    print("KERNEL_OK")
</pallas_src>

<mosaic_0001>
module attributes {stable_mosaic.version = 11 : i64} {
  func.func @ln_qkv_kernel(%arg0: i32, %arg1: i32, %arg2: memref<1x128x128xf32, #tpu.memory_space<vmem>>, %arg3: memref<1x128xf32, #tpu.memory_space<vmem>>, %arg4: memref<1x128xf32, #tpu.memory_space<vmem>>, %arg5: memref<128x384xbf16, #tpu.memory_space<vmem>>, %arg6: memref<1x384xf32, #tpu.memory_space<vmem>>, %arg7: memref<1x128x384xbf16, #tpu.memory_space<vmem>>) attributes {dimension_semantics = [#tpu.dimension_semantics<parallel>, #tpu.dimension_semantics<parallel>], iteration_bounds = array<i64: 2, 2>, scalar_prefetch = 0 : i64, scratch_operands = 0 : i64, tpu.core_type = #tpu.core_type<tc>, window_params = [{transform_indices = @transform_0, window_bounds = array<i64: 1, 128, 128>}, {pipeline_mode = #tpu.pipeline_mode<synchronous>, transform_indices = @transform_1, window_bounds = array<i64: 1, 128>}, {pipeline_mode = #tpu.pipeline_mode<synchronous>, transform_indices = @transform_2, window_bounds = array<i64: 1, 128>}, {pipeline_mode = #tpu.pipeline_mode<synchronous>, transform_indices = @transform_3, window_bounds = array<i64: 128, 384>}, {pipeline_mode = #tpu.pipeline_mode<synchronous>, transform_indices = @transform_4, window_bounds = array<i64: 1, 384>}, {transform_indices = @transform_5, window_bounds = array<i64: 1, 128, 384>}]} {
    %c0 = arith.constant 0 : index
    %c0_0 = arith.constant 0 : index
    %c0_1 = arith.constant 0 : index
    %0 = vector.load %arg2[%c0, %c0_0, %c0_1] : memref<1x128x128xf32, #tpu.memory_space<vmem>>, vector<1x128x128xf32>
    %1 = vector.shape_cast %0 : vector<1x128x128xf32> to vector<128x128xf32>
    %c0_2 = arith.constant 0 : index
    %c0_3 = arith.constant 0 : index
    %2 = vector.load %arg3[%c0_2, %c0_3] : memref<1x128xf32, #tpu.memory_space<vmem>>, vector<1x128xf32>
    %c0_4 = arith.constant 0 : index
    %c0_5 = arith.constant 0 : index
    %3 = vector.load %arg4[%c0_4, %c0_5] : memref<1x128xf32, #tpu.memory_space<vmem>>, vector<1x128xf32>
    %cst = arith.constant dense<0.000000e+00> : vector<128xf32>
    %4 = vector.multi_reduction <add>, %1, %cst [1] : vector<128x128xf32> to vector<128xf32>
    %5 = vector.shape_cast %4 : vector<128xf32> to vector<128x1xf32>
    %cst_6 = arith.constant 1.280000e+02 : f32
    %6 = vector.broadcast %cst_6 : f32 to vector<128x1xf32>
    %7 = arith.divf %5, %6 : vector<128x1xf32>
    %8 = vector.broadcast %7 : vector<128x1xf32> to vector<128x128xf32>
    %9 = arith.subf %1, %8 : vector<128x128xf32>
    %10 = arith.mulf %9, %9 : vector<128x128xf32>
    %cst_7 = arith.constant dense<0.000000e+00> : vector<128xf32>
    %11 = vector.multi_reduction <add>, %10, %cst_7 [1] : vector<128x128xf32> to vector<128xf32>
    %12 = vector.shape_cast %11 : vector<128xf32> to vector<128x1xf32>
    %cst_8 = arith.constant 1.280000e+02 : f32
    %13 = vector.broadcast %cst_8 : f32 to vector<128x1xf32>
    %14 = arith.divf %12, %13 : vector<128x1xf32>
    %cst_9 = arith.constant 9.99999974E-6 : f32
    %15 = vector.broadcast %cst_9 : f32 to vector<128x1xf32>
    %16 = arith.addf %14, %15 : vector<128x1xf32>
    %17 = math.rsqrt %16 : vector<128x1xf32>
    %18 = vector.broadcast %17 : vector<128x1xf32> to vector<128x128xf32>
    %19 = arith.mulf %9, %18 : vector<128x128xf32>
    %20 = vector.broadcast %2 : vector<1x128xf32> to vector<128x128xf32>
    %21 = arith.mulf %19, %20 : vector<128x128xf32>
    %22 = vector.broadcast %3 : vector<1x128xf32> to vector<128x128xf32>
    %23 = arith.addf %21, %22 : vector<128x128xf32>
    %24 = arith.truncf %23 : vector<128x128xf32> to vector<128x128xbf16>
    %c0_10 = arith.constant 0 : index
    %c0_11 = arith.constant 0 : index
    %25 = vector.load %arg5[%c0_10, %c0_11] : memref<128x384xbf16, #tpu.memory_space<vmem>>, vector<128x384xbf16>
    %cst_12 = arith.constant dense<0.000000e+00> : vector<128x384xf32>
    %26 = tpu.matmul %24, %25, %cst_12 {dimension_numbers = #tpu.dot_dimension_numbers<[1], [0], [0], [1], [0, 0, 1, 1], [], []>} : vector<128x128xbf16>, vector<128x384xbf16>, vector<128x384xf32> -> vector<128x384xf32>
    %c0_13 = arith.constant 0 : index
    %c0_14 = arith.constant 0 : index
    %27 = vector.load %arg6[%c0_13, %c0_14] : memref<1x384xf32, #tpu.memory_space<vmem>>, vector<1x384xf32>
    %28 = vector.broadcast %27 : vector<1x384xf32> to vector<128x384xf32>
    %29 = arith.addf %26, %28 : vector<128x384xf32>
    %30 = arith.truncf %29 : vector<128x384xf32> to vector<128x384xbf16>
    %c0_15 = arith.constant 0 : index
    %c0_16 = arith.constant 0 : index
    %c0_17 = arith.constant 0 : index
    %31 = vector.load %arg7[%c0_15, %c0_16, %c0_17] : memref<1x128x384xbf16, #tpu.memory_space<vmem>>, vector<1x128x384xbf16>
    %32 = vector.shape_cast %31 : vector<1x128x384xbf16> to vector<128x384xbf16>
    %33 = vector.shape_cast %30 : vector<128x384xbf16> to vector<1x128x384xbf16>
    tpu.vector_store %arg7[%c0_15, %c0_16, %c0_17], %33 {strides = array<i32>} : memref<1x128x384xbf16, #tpu.memory_space<vmem>>, vector<1x128x384xbf16>,
    return
  }
  func.func @transform_0(%arg0: i32, %arg1: i32) -> (i32, i32, i32) {
    %c0_i32 = arith.constant 0 : i32
    %c0_i32_0 = arith.constant 0 : i32
    return %arg0, %arg1, %c0_i32 : i32, i32, i32
  }
  func.func @transform_1(%arg0: i32, %arg1: i32) -> (i32, i32) {
    %c0_i32 = arith.constant 0 : i32
    %c0_i32_0 = arith.constant 0 : i32
    %c0_i32_1 = arith.constant 0 : i32
    return %c0_i32, %c0_i32_0 : i32, i32
  }
  func.func @transform_2(%arg0: i32, %arg1: i32) -> (i32, i32) {
    %c0_i32 = arith.constant 0 : i32
    %c0_i32_0 = arith.constant 0 : i32
    %c0_i32_1 = arith.constant 0 : i32
    return %c0_i32, %c0_i32_0 : i32, i32
  }
  func.func @transform_3(%arg0: i32, %arg1: i32) -> (i32, i32) {
    %c0_i32 = arith.constant 0 : i32
    %c0_i32_0 = arith.constant 0 : i32
    %c0_i32_1 = arith.constant 0 : i32
    return %c0_i32, %c0_i32_0 : i32, i32
  }
  func.func @transform_4(%arg0: i32, %arg1: i32) -> (i32, i32) {
    %c0_i32 = arith.constant 0 : i32
    %c0_i32_0 = arith.constant 0 : i32
    %c0_i32_1 = arith.constant 0 : i32
    return %c0_i32, %c0_i32_0 : i32, i32
  }
  func.func @transform_5(%arg0: i32, %arg1: i32) -> (i32, i32, i32) {
    %c0_i32 = arith.constant 0 : i32
    %c0_i32_0 = arith.constant 0 : i32
    return %arg0, %arg1, %c0_i32 : i32, i32, i32
  }
}

</mosaic_0001>

<bundles_post_ra>
// kernel: tpu_custom_call.1
= control target key start
LH: loop header
LB: loop body
LE: loop exit
PB: predicated region body
PF: predicated region fallthrough
CT: control target
= control target key end

     0   :  { %s2522_s0 = inlined_call_operand.hbm [shape: f32[2,256,128], index: 0, kind: input, shape index: {}]   ;;  %s2523_s1 = inlined_call_operand.hbm [shape: f32[1,128], index: 1, kind: input, shape index: {}]   ;;  %s2524_s2 = inlined_call_operand.hbm [shape: f32[1,128], index: 2, kind: input, shape index: {}]   ;;  %s2525_s3 = inlined_call_operand.hbm [shape: bf16[128,384], index: 3, kind: input, shape index: {}]   ;;  %s2526_s4 = inlined_call_operand.vmem [shape: f32[1,384], index: 4, kind: input, shape index: {}]   ;;  %s2527_s5 = inlined_call_operand.hbm [shape: bf16[2,256,384], index: 5, kind: output, shape index: {}]  }
   0x1   :  { %2534 = sst [smem:[#allocation20_spill]] %s2523_s1 }
   0x2   :  { %2535 = sst [smem:[#allocation21_spill]] %s2524_s2 }
   0x3   :  { %2536 = sst [smem:[#allocation22_spill]] %s2525_s3 }
   0x4   :  { %10 = vsyncpa [#allocation3], 0 }
   0x5   :  { %12 = vsyncpa [#allocation3 + $0x1], 0 }
   0x6   :  { %13 = vsyncpa [#allocation6], 0 }
   0x7   :  { %14 = vsyncpa [#allocation9], 0 }
   0x8   :  { %15 = vsyncpa [#allocation4], 0 }
   0x9   :  { %17 = vsyncpa [#allocation4 + $0x1], 0  ;;  %s1807_s18 = smov 0   ;;  %s1809_s19 = smov 0  }
   0xa   :  { %s1811_s20 = smov 0   ;;  %s1813_s21 = smov 0  }
   0xb   :  { %s1815_s22 = smov 0   ;;  %s1817_s23 = smov 0  }
   0xc   :  { %s1819_s24 = smov 0   ;;  %s1821_s25 = smov 0  }
   0xd LB: > { %2537 = sst [smem:[#allocation15_spill]] %s1737_s18  ;;  %s1219_s26 = sadd.s32 4294967295, %s1765_s25   ;;  %s1765_s25 = sphi %s1821_s25, %s23_s25   ;;  %s1761_s24 = sphi %s1819_s24, %s2574_s24   ;;  %s1757_s23 = sphi %s1817_s23, %s2569_s23   ;;  %s1753_s22 = sphi %s1815_s22, %s2573_s22   ;;  %s1749_s21 = sphi %s1813_s21, %s2568_s21   ;;  %s1745_s20 = sphi %s1811_s20, %s2572_s20   ;;  %s1741_s19 = sphi %s1809_s19, %s2571_s19   ;;  %s1737_s18 = sphi %s1807_s18, %s2570_s18  }
   0xe   : > { %2538 = sst [smem:[#allocation16_spill]] %s1757_s23  ;;  %s1220_s27 = sadd.s32 4294967294, %s1765_s25  }
   0xf   : > { %p57_p0 = scmp.ne.s32.totalorder %s1741_s19, %s1737_s18  ;;  %p1851_p1 = scmp.eq.s32.totalorder %s1219_s26, 0 }
  0x10   : > { %p1855_p2 = scmp.eq.s32.totalorder %s1219_s26, 3  ;;  %p173_p3 = scmp.eq.s32.totalorder %s1220_s27, 3 }
  0x11   : > { %p1861_p4 = por %p1851_p1, %p57_p0  ;;  %p1221_p5 = scmp.ge.s32.totalorder %s1765_s25, 1 }
  0x12   : > { %p1866_p6 = por %p173_p3, %p57_p0  ;;  %p180_p7 = scmp.lt.s32.totalorder %s1765_s25, 5 }
  0x13   : > { %s2544_s1 = sld [smem:[#allocation20_spill]]  ;;  %s1767_s11 = smov [#allocation5]  }
  0x14   : > { %s2542_s6 = scalar_select %p1866_p6, 1, 0 }
  0x15   : > { %p1874_p8 = pnand %p1221_p5, %p180_p7  ;;  %s194_s12 = sshll.u32 %s1767_s11, 4  ;;  %s195_s12 = int_to_ptr.vmem [resolvable:$true] %s194_s12 }
  0x16   : > { %2543 = sst [smem:[#allocation17_spill]] %s2542_s6  ;;  %s1768_s7 = smov [#allocation7]  }
  0x17   : > { %p1403_p9 = pneg %p1874_p8  ;;  %s2546_s2 = sld [smem:[#allocation21_spill]] }
  0x18   : > { %s2548_s3 = sld [smem:[#allocation22_spill]]  ;;  %s206_s8 = sshll.u32 %s1768_s7, 4  ;;  %s207_s8 = int_to_ptr.vmem [resolvable:$true] %s206_s8 }
  0x19   : > { %s192_s9 = sshll.u32 %s2544_s1, 4  ;;  %p1885_p10 = pnand %p1403_p9, %p1851_p1  ;;  %s193_s9 = int_to_ptr.hbm [resolvable:$true] %s192_s9 }
  0x1a   : > { %s1769_s11 = smov [#allocation8]   ;;  %s1770_s14 = smov 192  }
  0x1b   : > { %1406 = dma.hbm_to_vmem [thread:$0]  (!%p1885_p10), %s193_s9, 16, %s195_s12, [#allocation6]  }
  0x1c   : > { %s217_s13 = sshll.u32 %s1769_s11, 4  ;;  %s1771_s17 = smov 12   ;;  %s218_s13 = int_to_ptr.vmem [resolvable:$true] %s217_s13 }
  0x1d   : > { %s204_s15 = sshll.u32 %s2546_s2, 4  ;;  %s32_s26 = sadd.s32 1, %s1757_s23  ;;  %s205_s15 = int_to_ptr.hbm [resolvable:$true] %s204_s15 }
  0x1e   : > { %s215_s27 = sshll.u32 %s2548_s3, 4  ;;  %p33_p11 = scmp.ge.s32.totalorder %s32_s26, 2  ;;  %s216_s27 = int_to_ptr.hbm [resolvable:$true] %s215_s27 }
  0x1f   : > { %1409 = dma.hbm_to_vmem [thread:$0]  (!%p1885_p10), %s205_s15, 16, %s207_s8, [#allocation6]  }
  0x20   : > { %1412 = dma.hbm_to_vmem [thread:$0]  (!%p1885_p10), %s216_s27, 3072, %s218_s13, [#allocation9], %s1770_s14, %s1770_s14, %s1771_s17  }
  0x21   : > { %s35_s9 = sadd.s32 1, %s1761_s24  ;;  %s44_s12 = sadd.s32 1, %s1745_s20 }
  0x22   : > { %p51_p12 = scmp.ne.s32.totalorder %s1745_s20, %s1741_s19  ;;  %s2576_s26 = smov (%p33_p11, %s32_s26), 0 }
  0x23   : > { %2549 = sst [smem:[#allocation18_spill]] %s2576_s26  ;;  %s2578_s9 = smov (!%p33_p11, %s35_s9), %s1761_s24 }
  0x24   : > { %s40_s15 = ssub.s32 %s1757_s23, %s2576_s26  ;;  %p52_p13 = scmp.eq.s32.totalorder %s1765_s25, 0 }
  0x25   : > { %p37_p0 = scmp.ge.s32.totalorder %s2578_s9, 2  ;;  %p1911_p3 = por %p1855_p2, %p51_p12 }
  0x26   : > { %p1915_p5 = por %p52_p13, %p51_p12  ;;  %p1424_p7 = scmp.lt.s32.totalorder %s1765_s25, 4 }
  0x27   : > { %s2550_s16 = scalar_select %p1911_p3, 1, 0 }
  0x28   : > { %s2580_s9 = smov (%p37_p0, %s2578_s9), 0  ;;  %s234_s7 = sand.u32 1, %s1745_s20  }
  0x29   : > { %2551 = sst [smem:[#allocation19_spill]] %s2550_s16  ;;  %s1227_s8 = sshll.u32 %s1757_s23, 4 }
  0x2a   : > { %s39_s11 = ssub.s32 %s1761_s24, %s2580_s9  ;;  %s1226_s14 = sshll.u32 %s234_s7, 7 }
  0x2b   : > { %s41_s13 = sor.u32 %s40_s15, %s39_s11  ;;  %s1228_s29 = sshll.u32 %s1761_s24, 5 }
  0x2c   : > { %p42_p9 = scmp.eq.s32.totalorder %s41_s13, 0  ;;  %s238_s17 = scalar_lea.vmem [#allocation2], %s1226_s14 }
  0x2d   : > { %s248_s1 = sshll.u32 %s238_s17, 4  ;;  %s243_s3 = sadd.s32 %s1228_s29, %s1227_s8  ;;  %s249_s1 = int_to_ptr.vmem [resolvable:$true] %s248_s1 }
  0x2e   : > { %s1928_s2 = scalar_select %p42_p9, %s1745_s20, %s44_s12  }
  0x2f   : > { %s1229_s26 = sshll.u32 %s243_s3, 3  ;;  %p1414_p2 = pnand %p1424_p7, %p1915_p5 }
  0x30   : > { %s245_s16 = scalar_lea.hbm %s2522_s0, %s1229_s26  ;;  %s235_s15 = scalar_lea.sflag [#allocation3], %s234_s7 }
  0x31   : > { %s246_s23 = sshll.u32 %s245_s16, 4  ;;  %s1772_s11 = smov 128   ;;  %s247_s23 = int_to_ptr.hbm [resolvable:$true] %s246_s23 }
  0x32   : > { %s1773_s13 = smov 8   ;;  %260 = sbr.rel (%p1874_p8) target bundleno = 650 (0x28a), region = 40 }
  0x33   : > { %1416 = dma.hbm_to_vmem [thread:$0]  (!%p1414_p2), %s247_s23, 2048, %s249_s1, %s235_s15, %s1772_s11, %s1772_s11, %s1773_s13  }
  0x34   : > { %s1940_s12 = sand.u32 (!%p1874_p8), 1, %s1741_s19  }
  0x35   : > { %s1231_s3 = sshll.u32 (!%p1874_p8), %s1940_s12, 7  ;;  %s263_s27 = scalar_lea.sflag (!%p1874_p8), [#allocation3], %s1940_s12 }
  0x36   : > { %s1944_s8 = scalar_lea.vmem (!%p1874_p8), [#allocation2], %s1231_s3 }
  0x37   : > { %1720 = dma.done.wait (%p1861_p4), %s263_s27, 2048  }
  0x38   : > { %1722 = vsyncadd (%p1861_p4), %s263_s27, 4294965248 }
  0x39   : > { %1724 = dma.done.wait (%p1851_p1), [#allocation6], 32  }
  0x3a   : > { %1726 = vsyncadd (%p1851_p1), [#allocation6], 4294967264 }
  0x3b   : > { %1728 = dma.done.wait (%p1851_p1), [#allocation9], 3072  }
  0x3c   : > { %1730 = vsyncadd (%p1851_p1), [#allocation9], 4294964224  ;;  %v323_v0 = vld [vmem:[%s1944_s8 + $0x60] sm:$0xff]  ;;  %v313_v2 = vld [vmem:[%s1944_s8 + $0x10] sm:$0xff]  ;;  %v1774_v10 = vmov 128.0   ;;  %s1384_s23 = smul.u32 192, %s1940_s12 }
  0x3d   : > { %v311_v1 = vld [vmem:[%s1944_s8] sm:$0xff]  ;;  %353 = vadd.xlane.f32.xlu1 %v323_v0  ;;  %333 = vadd.xlane.f32.xlu2 %v313_v2  ;;  %v324_v3 = vld [vmem:[%s1944_s8 + $0x68] sm:$0xff]  ;;  %v314_v5 = vld [vmem:[%s1944_s8 + $0x18] sm:$0xff]  ;;  %1505 = vrcp.f32 %v1774_v10  ;;  %s1385_s30 = smul.u32 48, %s1749_s21  ;;  %s1082_s17 = scalar_lea.sflag [#allocation4], %s1940_s12 }
  0x3e   : > { %329 = vadd.xlane.f32.xlu0 %v311_v1  ;;  %v312_v4 = vld [vmem:[%s1944_s8 + $0x8] sm:$0xff]  ;;  %v325_v6 = vld [vmem:[%s1944_s8 + $0x70] sm:$0xff]  ;;  %v326_v7 = vld [vmem:[%s1944_s8 + $0x78] sm:$0xff]  ;;  %s2361_s28 = scalar_lea.vmem [#allocation10], %s1384_s23  ;;  %s1386_s6 = smul.u32 96, %s1753_s22 }
  0x3f   : > { %v315_v8 = vld [vmem:[%s1944_s8 + $0x20] sm:$0xff]  ;;  %v1968_v9 = vld [vmem:[%s1944_s8 + $0x28] sm:$0xff]  ;;  %v1991_v33 = vld [vmem:[%s1944_s8 + $0x38] sm:$0xff]  ;;  %s1097_s14 = sshll.u32 %s2361_s28, 4  ;;  %s1679_s27 = scalar_lea.hbm %s2527_s5, 768  ;;  %s1098_s14 = int_to_ptr.vmem [resolvable:$true] %s1097_s14 }
  0x40   : > { %v2008_v45 = vld [vmem:[%s1944_s8 + $0x30] sm:$0xff]  ;;  %v2023_v53 = vld [vmem:[%s1944_s8 + $0x48] sm:$0xff]  ;;  %v2035_v59 = vld [vmem:[%s1944_s8 + $0x40] sm:$0xff]  ;;  %s1094_s10 = sadd.s32 %s1386_s6, %s1385_s30 }
  0x41   : > { %v2031_v57 = vld [vmem:[%s1944_s8 + $0x50] sm:$0xff]  ;;  %v2043_v61 = vld [vmem:[%s1944_s8 + $0x58] sm:$0xff]  ;;  %v1321_v63 = vld [vmem:[#allocation8 + $0xa8] sm:$0xf]  ;;  %s1333_s21 = sshll.u32 %s1094_s10, 2 }
  0x42   : > { %v1354_v10 = vld [vmem:[#allocation8 + $0x94] sm:$0xf]  ;;  %s1096_s7 = scalar_lea.hbm %s2527_s5, %s1333_s21 }
  0x43   : > { %v1506_v11 = vpop.eup %1505  ;;  %s1099_s29 = sshll.u32 %s1096_s7, 4  ;;  %s1100_s29 = int_to_ptr.hbm [resolvable:$true] %s1099_s29 }
  0x44   : > { %v362_v12 = vmul.f32 128.0, %v1506_v11  ;;  %vm366_vm0 = vweird.f32 %v1506_v11  ;;  %s1673_s15 = sshra.s32 %s1100_s29, 4  ;;  %s1674_s15 = int_to_ptr.hbm [resolvable:$true] %s1673_s15 }
  0x45   : > { %355 = vadd.xlane.f32.xlu1 %v324_v3  ;;  %335 = vadd.xlane.f32.xlu2 %v314_v5  ;;  %s1675_s11 = scalar_lea.hbm %s1674_s15, 192  ;;  %p1680_p10 = scmp.lt.s32.totalorder %s1674_s15, %s2527_s5 }
  0x46   : > { %331 = vadd.xlane.f32.xlu0 %v312_v4  ;;  %v363_v13 = vsub.f32 1.0, %v362_v12  ;;  %v1311_v12 = vld [vmem:[#allocation8 + $0x9c] sm:$0xf0]  ;;  %p1676_p1 = scmp.ne.s32.totalorder %s1674_s15, %s1675_s11  ;;  %p1681_p11 = scmp.lt.s32.totalorder %s1679_s27, %s1675_s11 }
  0x48   : > { %v364_v14 = vmul.f32 %v1506_v11, %v363_v13  ;;  %v1317_v13 = vld [vmem:[#allocation8 + $0x98] sm:$0xf]  ;;  %p1677_p4 = pnand %p1676_p1, %p1911_p3  ;;  %p1682_p12 = por %p1681_p11, %p1680_p10 }
  0x4a   : > { %v365_v15 = vadd.f32 %v1506_v11, %v364_v14  ;;  %v1356_v14 = vld [vmem:[#allocation8 + $0xa0] sm:$0xf0]  ;;  %p1678_p8 = pneg %p1677_p4 }
  0x4c   : > { %v1971_v16 = vsel %vm366_vm0, %v1506_v11, %v365_v15  ;;  %v2054_v15 = vor.u32 %v1354_v10, %v1311_v12  ;;  %v1249_v10 = vld [vmem:[#allocation8 + $0x18] sm:$0xf]  ;;  %v1339_v12 = vld [vmem:[#allocation8 + $0x1c] sm:$0xf]  ;;  %p1683_p13 = pnand %p1682_p12, %p1678_p8 }
  0x4d   : > { %359 = vadd.xlane.f32.xlu1 %v326_v7  ;;  %337 = vadd.xlane.f32.xlu2 %v315_v8 }
  0x4e   : > { %357 = vadd.xlane.f32.xlu0 %v325_v6 }
  0x56   : > { %339 = vadd.xlane.f32.xlu0 %v1968_v9 }
  0xb0   : > { %v354_v17 = vpop.xlane.xlu1 %353  ;;  %v334_v23 = vpop.xlane.xlu2 %333 }
  0xb1   : > { %v330_v18 = vpop.xlane.xlu0 %329  ;;  %v380_v19 = vmul.f32 %v1971_v16, %v354_v17  ;;  %v370_v32 = vmul.f32 %v1971_v16, %v334_v23  ;;  %v2056_v17 = vor.u32 %v1356_v14, %v1317_v13 }
  0xb2   : > { %v368_v20 = vmul.f32 %v1971_v16, %v330_v18  ;;  %v1297_v18 = vld [vmem:[#allocation8 + $0x78] sm:$0xf] }
  0xb3   : > { %v1975_v21 = vsub.f32 %v323_v0, %v380_v19  ;;  %v1998_v37 = vsub.f32 %v313_v2, %v370_v32  ;;  %v1358_v0 = vld [vmem:[#allocation8 + $0xb0] sm:$0xf0]  ;;  %v1352_v19 = vld [vmem:[#allocation8 + $0x80] sm:$0xf0]  ;;  %v1349_v32 = vld [vmem:[#allocation8 + $0x68] sm:$0xf0] }
  0xb4   : > { %v1977_v22 = vsub.f32 %v311_v1, %v368_v20  ;;  %v1357_v1 = vld [vmem:[#allocation8 + $0xac] sm:$0xf]  ;;  %v1322_v2 = vor.u32 %v1358_v0, %v1321_v63  ;;  %v1351_v20 = vld [vmem:[#allocation8 + $0x7c] sm:$0xf]  ;;  %v1298_v23 = vor.u32 %v1352_v19, %v1297_v18  ;;  %v1342_v63 = vld [vmem:[#allocation8 + $0x34] sm:$0xf] }
  0xb5   : > { %v412_v24 = vmul.f32 %v1975_v21, %v1975_v21  ;;  %v402_v42 = vmul.f32 %v1998_v37, %v1998_v37  ;;  %v1251_v19 = vld [vmem:[#allocation8 + $0x24] sm:$0xf0] }
  0xb6   : > { %v400_v25 = vmul.f32 %v1977_v22, %v1977_v22  ;;  %870 = vmatpush.bf16.msra.mxu0 %v1322_v2  ;;  %1360 = vmatpush.bf16.msra.mxu3 %v1322_v2  ;;  %v1269_v2 = vld [vmem:[#allocation8 + $0x38] sm:$0xf] }
  0xb7   : > { %440 = vadd.xlane.f32.xlu0 %v412_v24  ;;  %v1299_v24 = vld [vmem:[#allocation8 + $0x84] sm:$0xf0] }
  0xb8   : > { %416 = vadd.xlane.f32.xlu1 %v400_v25  ;;  %v356_v26 = vpop.xlane.xlu1 %355  ;;  %v336_v36 = vpop.xlane.xlu2 %335  ;;  %v1305_v25 = vld [vmem:[#allocation8 + $0x80] sm:$0xf] }
  0xb9   : > { %v332_v27 = vpop.xlane.xlu0 %331  ;;  %v381_v28 = vmul.f32 %v1971_v16, %v356_v26  ;;  %v371_v44 = vmul.f32 %v1971_v16, %v336_v36  ;;  %v1353_v26 = vld [vmem:[#allocation8 + $0x88] sm:$0xf0]  ;;  %v1287_v36 = vld [vmem:[#allocation8 + $0x6c] sm:$0xf0] }
  0xba   : > { %v369_v29 = vmul.f32 %v1971_v16, %v332_v27  ;;  %v2060_v27 = vor.u32 %v1351_v20, %v1299_v24  ;;  %v1257_v20 = vld [vmem:[#allocation8 + $0x20] sm:$0xf]  ;;  %v2086_v24 = vor.u32 %v1339_v12, %v1251_v19 }
  0xbb   : > { %v1985_v30 = vsub.f32 %v324_v3, %v381_v28  ;;  %v2015_v48 = vsub.f32 %v314_v5, %v371_v44  ;;  %v1323_v3 = vld [vmem:[#allocation8 + $0xb4] sm:$0xf0]  ;;  %v1359_v5 = vld [vmem:[#allocation8 + $0xb8] sm:$0xf0]  ;;  %v2062_v28 = vor.u32 %v1353_v26, %v1305_v25  ;;  %v1346_v44 = vld [vmem:[#allocation8 + $0x50] sm:$0xf0] }
  0xbc   : > { %v1987_v31 = vsub.f32 %v312_v4, %v369_v29  ;;  %v1329_v4 = vld [vmem:[#allocation8 + $0xb0] sm:$0xf]  ;;  %v1285_v29 = vld [vmem:[#allocation8 + $0x60] sm:$0xf] }
  0xbd   : > { %v413_v34 = vmul.f32 %v1985_v30, %v1985_v30  ;;  %v403_v52 = vmul.f32 %v2015_v48, %v2015_v48 }
  0xbe   : > { %v401_v35 = vmul.f32 %v1987_v31, %v1987_v31 }
  0xbf   : > { %343 = vadd.xlane.f32.xlu0 %v1991_v33 }
  0xc0   : > { %442 = vadd.xlane.f32.xlu1 %v413_v34  ;;  %418 = vadd.xlane.f32.xlu2 %v401_v35  ;;  %v360_v39 = vpop.xlane.xlu1 %359  ;;  %v338_v49 = vpop.xlane.xlu2 %337  ;;  %v1348_v34 = vld [vmem:[#allocation8 + $0x64] sm:$0xf]  ;;  %v1286_v35 = vor.u32 %v1349_v32, %v1285_v29  ;;  %v1237_v32 = vld [vmem:[#allocation8] sm:$0xf] }
  0xc1   : > { %v358_v38 = vpop.xlane.xlu0 %357  ;;  %v383_v43 = vmul.f32 %v1971_v16, %v360_v39  ;;  %v372_v51 = vmul.f32 %v1971_v16, %v338_v49  ;;  %v1350_v39 = vld [vmem:[#allocation8 + $0x70] sm:$0xf0] }
  0xc2   : > { %v382_v40 = vmul.f32 %v1971_v16, %v358_v38  ;;  %v1293_v38 = vld [vmem:[#allocation8 + $0x68] sm:$0xf] }
  0xc3   : > { %v2012_v47 = vsub.f32 %v326_v7, %v383_v43  ;;  %v2026_v54 = vsub.f32 %v315_v8, %v372_v51  ;;  %v2050_v7 = vor.u32 %v1359_v5, %v1329_v4  ;;  %v1309_v8 = vld [vmem:[#allocation8 + $0x90] sm:$0xf]  ;;  %v1273_v43 = vld [vmem:[#allocation8 + $0x48] sm:$0xf] }
  0xc4   : > { %v2001_v41 = vsub.f32 %v325_v6, %v382_v40  ;;  %v2048_v6 = vor.u32 %v1357_v1, %v1323_v3  ;;  %v2066_v40 = vor.u32 %v1348_v34, %v1287_v36  ;;  %v1274_v49 = vor.u32 %v1346_v44, %v1273_v43  ;;  %v1281_v51 = vld [vmem:[#allocation8 + $0x50] sm:$0xf]  ;;  %v1263_v1 = vld [vmem:[#allocation8 + $0x3c] sm:$0xf0]  ;;  %v1344_v3 = vld [vmem:[#allocation8 + $0x40] sm:$0xf0] }
  0xc5   : > { %v415_v50 = vmul.f32 %v2012_v47, %v2012_v47  ;;  %v404_v56 = vmul.f32 %v2026_v54, %v2026_v54  ;;  %968 = vmatpush.bf16.msra.mxu2 %v2050_v7  ;;  %v2078_v4 = vor.u32 %v1342_v63, %v1263_v1  ;;  %v2080_v5 = vor.u32 %v1344_v3, %v1269_v2  ;;  %v1337_v34 = vld [vmem:[#allocation8 + $0x8] sm:$0xf0]  ;;  %v1338_v43 = vld [vmem:[#allocation8 + $0x10] sm:$0xf0] }
  0xc6   : > { %v414_v46 = vmul.f32 %v2001_v41, %v2001_v41  ;;  %919 = vmatpush.bf16.msra.mxu1 %v2048_v6  ;;  %v1238_v36 = vor.u32 %v1337_v34, %v1237_v32 }
  0xc8   : > { %420 = vadd.xlane.f32.xlu1 %v402_v42  ;;  %444 = vadd.xlane.f32.xlu0 %v414_v46  ;;  %v2068_v42 = vor.u32 %v1350_v39, %v1293_v38  ;;  %v1345_v46 = vld [vmem:[#allocation8 + $0x4c] sm:$0xf]  ;;  %v1239_v38 = vld [vmem:[#allocation8 + $0xc] sm:$0xf0]  ;;  %v1245_v39 = vld [vmem:[#allocation8 + $0x8] sm:$0xf] }
  0xc9   : > { %341 = vadd.xlane.f32.xlu2 %v2008_v45  ;;  %v340_v55 = vpop.xlane.xlu0 %339  ;;  %969 = vmatpush.bf16.msra.mxu2 %v2056_v17 }
  0xca   : > { %v373_v58 = vmul.f32 %v1971_v16, %v340_v55  ;;  %920 = vmatpush.bf16.msra.mxu1 %v2054_v15 }
  0xcc   : > { %v2040_v60 = vsub.f32 %v1968_v9, %v373_v58  ;;  %v1355_v9 = vld [vmem:[#allocation8 + $0x98] sm:$0xf0]  ;;  %v1261_v58 = vld [vmem:[#allocation8 + $0x30] sm:$0xf] }
  0xcd   : > { %v1310_v11 = vor.u32 %v1355_v9, %v1309_v8  ;;  %970 = vmatpush.bf16.msra.mxu2 %v2062_v28 }
  0xce   : > { %v405_v62 = vmul.f32 %v2040_v60, %v2040_v60  ;;  %921 = vmatpush.bf16.msra.mxu1 %v2060_v27 }
  0xcf   : > { %871 = vmatpush.bf16.msra.mxu0 %v1310_v11  ;;  %1361 = vmatpush.bf16.msra.mxu3 %v1310_v11  ;;  %v1340_v11 = vld [vmem:[#allocation8 + $0x20] sm:$0xf0] }
  0xd0   : > { %446 = vadd.xlane.f32.xlu1 %v415_v50  ;;  %347 = vadd.xlane.f32.xlu0 %v2023_v53  ;;  %v1275_v50 = vld [vmem:[#allocation8 + $0x54] sm:$0xf0]  ;;  %v1250_v18 = vor.u32 %v1340_v11, %v1249_v10 }
  0xd1   : > { %422 = vadd.xlane.f32.xlu2 %v403_v52  ;;  %971 = vmatpush.bf16.msra.mxu2 %v2068_v42  ;;  %v1347_v52 = vld [vmem:[#allocation8 + $0x58] sm:$0xf0]  ;;  %v2072_v55 = vor.u32 %v1345_v46, %v1275_v50  ;;  %v2100_v46 = vor.u32 %v1338_v43, %v1245_v39 }
  0xd2   : > { %922 = vmatpush.bf16.msra.mxu1 %v2066_v40 }
  0xd3   : > { %872 = vmatpush.bf16.msra.mxu0 %v1298_v23  ;;  %1362 = vmatpush.bf16.msra.mxu3 %v1298_v23  ;;  %v1341_v23 = vld [vmem:[#allocation8 + $0x28] sm:$0xf0] }
  0xd4   : > { %v2088_v25 = vor.u32 %v1341_v23, %v1257_v20 }
  0xd6   : > { %923 = vmatpush.bf16.msra.mxu1 %v2072_v55 }
  0xd7   : > { %873 = vmatpush.bf16.msra.mxu0 %v1286_v35  ;;  %1363 = vmatpush.bf16.msra.mxu3 %v1286_v35  ;;  %v1336_v35 = vld [vmem:[#allocation8 + $0x4] sm:$0xf] }
  0xd8   : > { %424 = vadd.xlane.f32.xlu1 %v404_v56  ;;  %349 = vadd.xlane.f32.xlu0 %v2031_v57  ;;  %v2074_v56 = vor.u32 %v1347_v52, %v1281_v51  ;;  %v2098_v44 = vor.u32 %v1336_v35, %v1239_v38 }
  0xd9   : > { %345 = vadd.xlane.f32.xlu2 %v2035_v59 }
  0xda   : > { %972 = vmatpush.bf16.msra.mxu2 %v2074_v56  ;;  %924 = vmatpush.bf16.msra.mxu1 %v2078_v4 }
  0xdb   : > { %874 = vmatpush.bf16.msra.mxu0 %v1274_v49  ;;  %1364 = vmatpush.bf16.msra.mxu3 %v1274_v49 }
  0xde   : > { %973 = vmatpush.bf16.msra.mxu2 %v2080_v5  ;;  %925 = vmatpush.bf16.msra.mxu1 %v2086_v24 }
  0xe0   : > { %351 = vadd.xlane.f32.xlu1 %v2043_v61 }
  0xe1   : > { %426 = vadd.xlane.f32.xlu2 %v405_v62  ;;  %v1343_v62 = vld [vmem:[#allocation8 + $0x38] sm:$0xf0] }
  0xe2   : > { %v1262_v0 = vor.u32 %v1343_v62, %v1261_v58  ;;  %974 = vmatpush.bf16.msra.mxu2 %v2088_v25  ;;  %926 = vmatpush.bf16.msra.mxu1 %v2098_v44 }
  0xe4   : > { %875 = vmatpush.bf16.msra.mxu0 %v1262_v0  ;;  %1365 = vmatpush.bf16.msra.mxu3 %v1262_v0 }
  0xe6   : > { %975 = vmatpush.bf16.msra.mxu2 %v2100_v46 }
  0xe8   : > { %876 = vmatpush.bf16.msra.mxu0 %v1250_v18  ;;  %1366 = vmatpush.bf16.msra.mxu3 %v1250_v18 }
  0xec   : > { %877 = vmatpush.bf16.msra.mxu0 %v1238_v36  ;;  %1367 = vmatpush.bf16.msra.mxu3 %v1238_v36 }
  0xf0   : > { %1368 = vmatpush.bf16.msrb.mxu3 %v2048_v6 }
  0xf4   : > { %1369 = vmatpush.bf16.msrb.mxu3 %v2054_v15 }
  0xf8   : > { %1370 = vmatpush.bf16.msrb.mxu3 %v2060_v27 }
  0xfc   : > { %1371 = vmatpush.bf16.msrb.mxu3 %v2066_v40 }
 0x100   : > { %1372 = vmatpush.bf16.msrb.mxu3 %v2072_v55 }
 0x104   : > { %1373 = vmatpush.bf16.msrb.mxu3 %v2078_v4 }
 0x108   : > { %1374 = vmatpush.bf16.msrb.mxu3 %v2086_v24 }
 0x10c   : > { %1375 = vmatpush.bf16.msrb.mxu3 %v2098_v44 }
 0x12a   : > { %v441_v9 = vpop.xlane.xlu0 %440 }
 0x12b   : > { %v417_v8 = vpop.xlane.xlu1 %416  ;;  %v460_v14 = vmul.f32 %v441_v9, %v1971_v16 }
 0x12c   : > { %v448_v13 = vmul.f32 %v417_v8, %v1971_v16 }
 0x12d   : > { %v2092_v29 = vadd.f32 1e-05, %v460_v14 }
 0x12e   : > { %v2090_v26 = vadd.f32 1e-05, %v448_v13 }
 0x12f   : > { %vm606_vm4 = vweird.f32 %v2092_v29 }
 0x130   : > { %1507 = vrsqrt.f32 %v2090_v26  ;;  %vm486_vm2 = vweird.f32 %v2090_v26 }
 0x131   : > { %1509 = vrsqrt.f32 %v2092_v29 }
 0x132   : > { %v344_v50 = vpop.xlane.xlu0 %343 }
 0x133   : > { %v443_v49 = vpop.xlane.xlu1 %442  ;;  %v419_v52 = vpop.xlane.xlu2 %418  ;;  %v375_v58 = vmul.f32 %v1971_v16, %v344_v50 }
 0x134   : > { %v461_v51 = vmul.f32 %v443_v49, %v1971_v16  ;;  %v449_v62 = vmul.f32 %v419_v52, %v1971_v16 }
 0x135   : > { %v2113_v1 = vsub.f32 %v1991_v33, %v375_v58 }
 0x136   : > { %v2108_v63 = vpop.eup %1507  ;;  %v2110_v0 = vadd.f32 1e-05, %v461_v51  ;;  %v2119_v8 = vadd.f32 1e-05, %v449_v62 }
 0x137   : > { %v2115_v2 = vpop.eup %1509  ;;  %v481_v3 = vmul.f32 %v2108_v63, %v2090_v26  ;;  %v407_v33 = vmul.f32 %v2113_v1, %v2113_v1  ;;  %vm487_vm1 = vweird.f32 %v2108_v63 }
 0x138   : > { %v601_v9 = vmul.f32 %v2115_v2, %v2092_v29  ;;  %1511 = vrsqrt.f32 %v2110_v0  ;;  %vm2149_vm3 = vmor %vm486_vm2, %vm487_vm1  ;;  %vm607_vm5 = vweird.f32 %v2115_v2  ;;  %vm616_vm6 = vweird.f32 %v2110_v0 }
 0x139   : > { %v482_v6 = vmul.f32 %v2108_v63, %v481_v3  ;;  %1513 = vrsqrt.f32 %v2119_v8  ;;  %430 = vadd.xlane.f32.xlu0 %v407_v33  ;;  %vm2165_vm7 = vmor %vm606_vm4, %vm607_vm5  ;;  %vm496_vm11 = vweird.f32 %v2119_v8 }
 0x13a   : > { %v602_v10 = vmul.f32 %v2115_v2, %v601_v9 }
 0x13b   : > { %v483_v11 = vmul.f32 0.5, %v482_v6  ;;  %v421_v12 = vpop.xlane.xlu1 %420  ;;  %v445_v13 = vpop.xlane.xlu0 %444 }
 0x13c   : > { %v603_v14 = vmul.f32 0.5, %v602_v10  ;;  %v450_v18 = vmul.f32 %v421_v12, %v1971_v16  ;;  %v342_v19 = vpop.xlane.xlu2 %341  ;;  %v462_v20 = vmul.f32 %v445_v13, %v1971_v16 }
 0x13d   : > { %v484_v15 = vsub.f32 1.5, %v483_v11  ;;  %v374_v23 = vmul.f32 %v1971_v16, %v342_v19  ;;  %v2178_v19 = vld [vmem:[#allocation5] ss:$0 sm:$0xff] }
 0x13e   : > { %v1512_v32 = vpop.eup %1511  ;;  %v604_v34 = vsub.f32 1.5, %v603_v14  ;;  %v2134_v35 = vadd.f32 1e-05, %v450_v18  ;;  %v2136_v36 = vadd.f32 1e-05, %v462_v20 }
 0x13f   : > { %v1514_v38 = vpop.eup %1513  ;;  %v485_v39 = vmul.f32 %v2108_v63, %v484_v15  ;;  %v611_v43 = vmul.f32 %v1512_v32, %v2110_v0  ;;  %v2142_v49 = vsub.f32 %v2008_v45, %v374_v23  ;;  %vm617_vm8 = vweird.f32 %v1512_v32 }
 0x140   : > { %v491_v27 = vmul.f32 %v1514_v38, %v2119_v8  ;;  %1515 = vrsqrt.f32 %v2134_v35  ;;  %v605_v52 = vmul.f32 %v2115_v2, %v604_v34  ;;  %vm497_vm9 = vweird.f32 %v1514_v38  ;;  %vm618_vm10 = vmor %vm616_vm6, %vm617_vm8 }
 0x141   : > { %v612_v50 = vmul.f32 %v1512_v32, %v611_v43  ;;  %1517 = vrsqrt.f32 %v2136_v36  ;;  %v489_v40 = vsel %vm2149_vm3, %v2108_v63, %v485_v39  ;;  %v406_v26 = vmul.f32 %v2142_v49, %v2142_v49  ;;  %vm498_vm12 = vmor %vm496_vm11, %vm497_vm9 }
 0x142   : > { %v492_v45 = vmul.f32 %v1514_v38, %v491_v27  ;;  %v640_v13 = vmul.f32 %v489_v40, %v1977_v22  ;;  %v609_v14 = vsel %vm2165_vm7, %v2115_v2, %v605_v52  ;;  %v2204_v52 = vld [vmem:[#allocation7] ss:$0 sm:$0xff]  ;;  %vm626_vm13 = vweird.f32 %v2136_v36 }
 0x143   : > { %v613_v58 = vmul.f32 0.5, %v612_v50  ;;  %v447_v62 = vpop.xlane.xlu1 %446  ;;  %v348_v3 = vpop.xlane.xlu0 %347  ;;  %428 = vadd.xlane.f32.xlu2 %v406_v26  ;;  %v652_v43 = vmul.f32 %v609_v14, %v1975_v21  ;;  %vm506_vm0 = vweird.f32 %v2134_v35 }
 0x144   : > { %v493_v9 = vmul.f32 0.5, %v492_v45  ;;  %v463_v6 = vmul.f32 %v447_v62, %v1971_v16  ;;  %v423_v33 = vpop.xlane.xlu2 %422  ;;  %v377_v29 = vmul.f32 %v1971_v16, %v348_v3  ;;  %v659_v51 = vmul.f32 %v2178_v19, %v640_v13 }
 0x145   : > { %v614_v63 = vsub.f32 1.5, %v613_v58  ;;  %v451_v11 = vmul.f32 %v423_v33, %v1971_v16 }
 0x146   : > { %v2170_v12 = vpop.eup %1515  ;;  %v494_v18 = vsub.f32 1.5, %v493_v9  ;;  %v2176_v55 = vadd.f32 1e-05, %v463_v6  ;;  %v2187_v39 = vsub.f32 %v2023_v53, %v377_v29  ;;  %v671_v6 = vmul.f32 %v2178_v19, %v652_v43 }
 0x147   : > { %v2180_v20 = vpop.eup %1517  ;;  %v615_v15 = vmul.f32 %v1512_v32, %v614_v63  ;;  %v501_v23 = vmul.f32 %v2170_v12, %v2134_v35  ;;  %v2184_v34 = vadd.f32 1e-05, %v451_v11  ;;  %vm507_vm14 = vweird.f32 %v2170_v12 }
 0x148   : > { %v495_v22 = vmul.f32 %v1514_v38, %v494_v18  ;;  %v621_v2 = vmul.f32 %v2180_v20, %v2136_v36  ;;  %1519 = vrsqrt.f32 %v2176_v55  ;;  %v409_v21 = vmul.f32 %v2187_v39, %v2187_v39  ;;  %vm2246_vm1 = vmor %vm506_vm0, %vm507_vm14 }
 0x149   : > { %v619_v27 = vsel %vm618_vm10, %v1512_v32, %v615_v15  ;;  %v502_v53 = vmul.f32 %v2170_v12, %v501_v23  ;;  %1521 = vrsqrt.f32 %v2184_v34  ;;  %v678_v63 = vadd.f32 %v2204_v52, %v659_v51 }
 0x14a   : > { %v653_v0 = vmul.f32 %v619_v27, %v1985_v30  ;;  %v499_v50 = vsel %vm498_vm12, %v1514_v38, %v495_v22  ;;  %v622_v8 = vmul.f32 %v2180_v20, %v621_v2  ;;  %vm627_vm15 = vweird.f32 %v2180_v20 }
 0x14b   : > { %v641_v4 = vmul.f32 %v499_v50, %v1987_v31  ;;  %v503_v45 = vmul.f32 0.5, %v502_v53  ;;  %v425_v32 = vpop.xlane.xlu1 %424  ;;  %v350_v40 = vpop.xlane.xlu0 %349  ;;  %434 = vadd.xlane.f32.xlu2 %v409_v21  ;;  %v690_v43 = vadd.f32 %v2204_v52, %v671_v6  ;;  %vm636_vm2 = vweird.f32 %v2176_v55  ;;  %vm2260_vm3 = vmor %vm626_vm13, %vm627_vm15 }
 0x14c   : > { %v623_v58 = vmul.f32 0.5, %v622_v8  ;;  %v452_v30 = vmul.f32 %v425_v32, %v1971_v16  ;;  %v346_v38 = vpop.xlane.xlu2 %345  ;;  %v378_v26 = vmul.f32 %v1971_v16, %v350_v40  ;;  %v672_v62 = vmul.f32 %v2178_v19, %v653_v0 }
 0x14d   : > { %v504_v3 = vsub.f32 1.5, %v503_v45  ;;  %v376_v31 = vmul.f32 %v1971_v16, %v346_v38  ;;  %v660_v9 = vmul.f32 %v2178_v19, %v641_v4  ;;  %vm516_vm7 = vweird.f32 %v2184_v34 }
 0x14e   : > { %v2217_v33 = vpop.eup %1519  ;;  %v624_v29 = vsub.f32 1.5, %v623_v58  ;;  %v2220_v10 = vadd.f32 1e-05, %v452_v30  ;;  %v691_v14 = vadd.f32 %v2204_v52, %v672_v62  ;;  %v2234_v23 = vsub.f32 %v2031_v57, %v378_v26 }
 0x14f   : > { %v1522_v11 = vpop.eup %1521  ;;  %v631_v24 = vmul.f32 %v2217_v33, %v2176_v55  ;;  %v2227_v13 = vsub.f32 %v2035_v59, %v376_v31  ;;  %v505_v18 = vmul.f32 %v2170_v12, %v504_v3  ;;  %v679_v59 = vadd.f32 %v2204_v52, %v660_v9 }
 0x150   : > { %v511_v15 = vmul.f32 %v1522_v11, %v2184_v34  ;;  %1523 = vrsqrt.f32 %v2220_v10  ;;  %v625_v22 = vmul.f32 %v2180_v20, %v624_v29  ;;  %v2251_v50 = vpack.c.bf16 %v691_v14, %v690_v43 }
 0x151   : > { %v632_v2 = vmul.f32 %v2217_v33, %v631_v24  ;;  %v408_v53 = vmul.f32 %v2227_v13, %v2227_v13  ;;  %v694_v0 = vpack.c.bf16 %v679_v59, %v678_v63  ;;  %v509_v35 = vsel %vm2246_vm1, %v2170_v12, %v505_v18 }
 0x152   : > { %v512_v27 = vmul.f32 %v1522_v11, %v511_v15  ;;  %v410_v45 = vmul.f32 %v2234_v23, %v2234_v23  ;;  %v629_v12 = vsel %vm2260_vm3, %v2180_v20, %v625_v22  ;;  %vm637_vm4 = vweird.f32 %v2217_v33  ;;  %908 = vmatmul.bf16.vlgmr.msra.gmra.mxu3 %v2251_v50 }
 0x153   : > { %v633_v44 = vmul.f32 0.5, %v632_v2  ;;  %v352_v8 = vpop.xlane.xlu1 %351  ;;  %432 = vadd.xlane.f32.xlu1 %v408_v53  ;;  %878 = vmatmul.bf16.vlgmr.msra.gmra.mxu0 %v694_v0  ;;  %vm517_vm5 = vweird.f32 %v1522_v11  ;;  %v642_v26 = vmul.f32 %v509_v35, %v1998_v37  ;;  %v654_v31 = vmul.f32 %v629_v12, %v2001_v41  ;;  %vm638_vm6 = vmor %vm636_vm2, %vm637_vm4 }
 0x154   : > { %v513_v4 = vmul.f32 0.5, %v512_v27  ;;  %v379_v21 = vmul.f32 %v1971_v16, %v352_v8  ;;  %v427_v32 = vpop.xlane.xlu2 %426  ;;  %927 = vmatmul.bf16.vlgmr.msra.gmra.mxu1 %v694_v0  ;;  %976 = vmatmul.bf16.vlgmr.msra.gmra.mxu2 %v694_v0  ;;  %vm518_vm8 = vmor %vm516_vm7, %vm517_vm5  ;;  %vm526_vm9 = vweird.f32 %v2220_v10 }
 0x155   : > { %v634_v40 = vsub.f32 1.5, %v633_v44  ;;  %v453_v36 = vmul.f32 %v427_v32, %v1971_v16  ;;  %436 = vadd.xlane.f32.xlu0 %v410_v45  ;;  %1376 = vmatpush.bf16.msra.mxu3 %v2050_v7  ;;  %v661_v55 = vmul.f32 %v2178_v19, %v642_v26  ;;  %v673_v34 = vmul.f32 %v2178_v19, %v654_v31 }
 0x156   : > { %v1524_v58 = vpop.eup %1523  ;;  %v514_v30 = vsub.f32 1.5, %v513_v4  ;;  %v2274_v38 = vsub.f32 %v2043_v61, %v379_v21 }
 0x157   : > { %v635_v20 = vmul.f32 %v2217_v33, %v634_v40  ;;  %v521_v62 = vmul.f32 %v1524_v58, %v2220_v10  ;;  %v469_v3 = vadd.f32 1e-05, %v453_v36  ;;  %vm527_vm10 = vweird.f32 %v1524_v58 }
 0x158   : > { %v515_v9 = vmul.f32 %v1522_v11, %v514_v30  ;;  %v411_v37 = vmul.f32 %v2274_v38, %v2274_v38  ;;  %v692_v22 = vadd.f32 %v2204_v52, %v673_v34  ;;  %vm528_vm11 = vmor %vm526_vm9, %vm527_vm10 }
 0x159   : > { %v639_v61 = vsel %vm638_vm6, %v2217_v33, %v635_v20  ;;  %v522_v6 = vmul.f32 %v1524_v58, %v521_v62  ;;  %1525 = vrsqrt.f32 %v469_v3  ;;  %1377 = vmatpush.bf16.msra.mxu3 %v2056_v17  ;;  %vm536_vm12 = vweird.f32 %v469_v3 }
 0x15a   : > { %v655_v7 = vmul.f32 %v639_v61, %v2012_v47  ;;  %v519_v41 = vsel %vm518_vm8, %v1522_v11, %v515_v9  ;;  %v680_v47 = vadd.f32 %v2204_v52, %v661_v55 }
 0x15b   : > { %v643_v29 = vmul.f32 %v519_v41, %v2015_v48  ;;  %v523_v63 = vmul.f32 0.5, %v522_v6  ;;  %438 = vadd.xlane.f32.xlu1 %v411_v37 }
 0x15c   : > { %v674_v24 = vmul.f32 %v2178_v19, %v655_v7 }
 0x15d   : > { %v524_v33 = vsub.f32 1.5, %v523_v63  ;;  %v662_v14 = vmul.f32 %v2178_v19, %v643_v29  ;;  %1378 = vmatpush.bf16.msra.mxu3 %v2062_v28 }
 0x15e   : > { %v693_v18 = vadd.f32 %v2204_v52, %v674_v24  ;;  %v734_v24 = vld [vmem:[%s2526_s4] sm:$0x7] }
 0x15f   : > { %v1526_v15 = vpop.eup %1525  ;;  %v681_v48 = vadd.f32 %v2204_v52, %v662_v14  ;;  %v525_v17 = vmul.f32 %v1524_v58, %v524_v33 }
 0x160   : > { %v531_v11 = vmul.f32 %v1526_v15, %v469_v3  ;;  %v701_v43 = vpack.c.bf16 %v693_v18, %v692_v22  ;;  %vm537_vm13 = vweird.f32 %v1526_v15 }
 0x161   : > { %v695_v2 = vpack.c.bf16 %v681_v48, %v680_v47  ;;  %1379 = vmatpush.bf16.msra.mxu3 %v2068_v42  ;;  %v529_v27 = vsel %vm528_vm11, %v1524_v58, %v525_v17  ;;  %vm538_vm14 = vmor %vm536_vm12, %vm537_vm13  ;;  %v2334_v48 = vperm.slane %v734_v24, 1 }
 0x162   : > { %v532_v59 = vmul.f32 %v1526_v15, %v531_v11  ;;  %913 = vmatmul.bf16.gmra.mxu3 %v701_v43  ;;  %v644_v28 = vmul.f32 %v529_v27, %v2026_v54 }
 0x163   : > { %883 = vmatmul.bf16.gmra.mxu0 %v695_v2 }
 0x164   : > { %v533_v53 = vmul.f32 0.5, %v532_v59  ;;  %932 = vmatmul.bf16.gmra.mxu1 %v695_v2  ;;  %981 = vmatmul.bf16.gmra.mxu2 %v695_v2  ;;  %v663_v42 = vmul.f32 %v2178_v19, %v644_v28 }
 0x165   : > { %1380 = vmatpush.bf16.msra.mxu3 %v2074_v56 }
 0x166   : > { %v534_v10 = vsub.f32 1.5, %v533_v53  ;;  %v682_v35 = vadd.f32 %v2204_v52, %v663_v42 }
 0x168   : > { %v535_v57 = vmul.f32 %v1526_v15, %v534_v10 }
 0x169   : > { %1381 = vmatpush.bf16.msra.mxu3 %v2080_v5 }
 0x16a   : > { %v539_v44 = vsel %vm538_vm14, %v1526_v15, %v535_v57 }
 0x16b   : > { %v645_v0 = vmul.f32 %v539_v44, %v2040_v60 }
 0x16d   : > { %v664_v8 = vmul.f32 %v2178_v19, %v645_v0  ;;  %1382 = vmatpush.bf16.msra.mxu3 %v2088_v25 }
 0x16f   : > { %v683_v51 = vadd.f32 %v2204_v52, %v664_v8 }
 0x171   : > { %v696_v54 = vpack.c.bf16 %v683_v51, %v682_v35  ;;  %1383 = vmatpush.bf16.msra.mxu3 %v2100_v46 }
 0x172   : > { %957 = vmatmul.bf16.vlgmr.msrb.gmra.mxu3 %v2251_v50 }
 0x173   : > { %888 = vmatmul.bf16.gmra.mxu0 %v696_v54 }
 0x174   : > { %937 = vmatmul.bf16.gmra.mxu1 %v696_v54  ;;  %986 = vmatmul.bf16.gmra.mxu2 %v696_v54 }
 0x182   : > { %962 = vmatmul.bf16.gmra.mxu3 %v701_v43 }
 0x192   : > { %1006 = vmatmul.bf16.vlgmr.msra.gmra.mxu3 %v2251_v50 }
 0x1a2   : > { %1011 = vmatmul.bf16.gmra.mxu3 %v701_v43 }
 0x1ac   : > { %v431_v60 = vpop.xlane.xlu0 %430 }
 0x1ad   : > { %v455_v56 = vmul.f32 %v431_v60, %v1971_v16 }
 0x1af   : > { %v471_v5 = vadd.f32 1e-05, %v455_v56  ;;  %v2357_v56 = vperm.slane %v734_v24, 2 }
 0x1b1   : > { %1527 = vrsqrt.f32 %v471_v5  ;;  %vm556_vm15 = vweird.f32 %v471_v5 }
 0x1b6   : > { %v429_v4 = vpop.xlane.xlu2 %428 }
 0x1b7   : > { %v1528_v45 = vpop.eup %1527  ;;  %v454_v25 = vmul.f32 %v429_v4, %v1971_v16 }
 0x1b8   : > { %v551_v21 = vmul.f32 %v1528_v45, %v471_v5  ;;  %vm557_vm0 = vweird.f32 %v1528_v45 }
 0x1b9   : > { %v470_v46 = vadd.f32 1e-05, %v454_v25  ;;  %vm558_vm1 = vmor %vm556_vm15, %vm557_vm0 }
 0x1ba   : > { %v552_v32 = vmul.f32 %v1528_v45, %v551_v21 }
 0x1bb   : > { %1529 = vrsqrt.f32 %v470_v46  ;;  %vm546_vm3 = vweird.f32 %v470_v46 }
 0x1bc   : > { %v553_v12 = vmul.f32 0.5, %v552_v32 }
 0x1be   : > { %v435_v40 = vpop.xlane.xlu2 %434  ;;  %v554_v36 = vsub.f32 1.5, %v553_v12 }
 0x1bf   : > { %v457_v58 = vmul.f32 %v435_v40, %v1971_v16 }
 0x1c0   : > { %v555_v20 = vmul.f32 %v1528_v45, %v554_v36 }
 0x1c1   : > { %v1530_v50 = vpop.eup %1529  ;;  %v473_v30 = vadd.f32 1e-05, %v457_v58 }
 0x1c2   : > { %v541_v26 = vmul.f32 %v1530_v50, %v470_v46  ;;  %v559_v37 = vsel %vm558_vm1, %v1528_v45, %v555_v20  ;;  %vm547_vm2 = vweird.f32 %v1530_v50 }
 0x1c3   : > { %1531 = vrsqrt.f32 %v473_v30  ;;  %v647_v63 = vmul.f32 %v559_v37, %v2113_v1  ;;  %vm548_vm4 = vmor %vm546_vm3, %vm547_vm2  ;;  %v2332_v1 = vperm.slane %v734_v24, 0  ;;  %vm576_vm5 = vweird.f32 %v473_v30 }
 0x1c4   : > { %v542_v62 = vmul.f32 %v1530_v50, %v541_v26 }
 0x1c5   : > { %v666_v22 = vmul.f32 %v2178_v19, %v647_v63 }
 0x1c6   : > { %v433_v3 = vpop.xlane.xlu1 %432  ;;  %v543_v31 = vmul.f32 0.5, %v542_v62 }
 0x1c7   : > { %v456_v9 = vmul.f32 %v433_v3, %v1971_v16  ;;  %v685_v0 = vadd.f32 %v2204_v52, %v666_v22 }
 0x1c8   : > { %v544_v61 = vsub.f32 1.5, %v543_v31  ;;  %v437_v7 = vpop.xlane.xlu0 %436 }
 0x1c9   : > { %v2320_v6 = vadd.f32 1e-05, %v456_v9  ;;  %v1532_v41 = vpop.eup %1531  ;;  %v458_v29 = vmul.f32 %v437_v7, %v1971_v16 }
 0x1ca   : > { %v545_v55 = vmul.f32 %v1530_v50, %v544_v61  ;;  %v571_v34 = vmul.f32 %v1532_v41, %v473_v30  ;;  %vm577_vm6 = vweird.f32 %v1532_v41 }
 0x1cb   : > { %1533 = vrsqrt.f32 %v2320_v6  ;;  %v2328_v33 = vadd.f32 1e-05, %v458_v29  ;;  %vm2351_vm7 = vmor %vm576_vm5, %vm577_vm6  ;;  %vm566_vm9 = vweird.f32 %v2320_v6 }
 0x1cc   : > { %v549_v14 = vsel %vm548_vm4, %v1530_v50, %v545_v55  ;;  %v572_v18 = vmul.f32 %v1532_v41, %v571_v34 }
 0x1cd   : > { %v646_v15 = vmul.f32 %v549_v14, %v2142_v49  ;;  %1535 = vrsqrt.f32 %v2328_v33  ;;  %vm586_vm11 = vweird.f32 %v2328_v33 }
 0x1ce   : > { %v439_v47 = vpop.xlane.xlu1 %438  ;;  %v573_v17 = vmul.f32 0.5, %v572_v18 }
 0x1cf   : > { %v459_v11 = vmul.f32 %v439_v47, %v1971_v16  ;;  %v665_v2 = vmul.f32 %v2178_v19, %v646_v15 }
 0x1d0   : > { %v574_v43 = vsub.f32 1.5, %v573_v17  ;;  %v879_v49 = vpop.f32.mrf.mxu0 }
 0x1d1   : > { %v1534_v59 = vpop.eup %1533  ;;  %v2340_v27 = vadd.f32 1e-05, %v459_v11  ;;  %v928_v53 = vpop.f32.mrf.mxu1  ;;  %v880_v28 = vadd.f32 %v879_v49, %v2332_v1  ;;  %v684_v44 = vadd.f32 %v2204_v52, %v665_v2 }
 0x1d2   : > { %v561_v10 = vmul.f32 %v1534_v59, %v2320_v6  ;;  %v929_v57 = vadd.f32 %v928_v53, %v2334_v48  ;;  %v575_v16 = vmul.f32 %v1532_v41, %v574_v43  ;;  %vm567_vm8 = vweird.f32 %v1534_v59 }
 0x1d3   : > { %1537 = vrsqrt.f32 %v2340_v27  ;;  %v2348_v42 = vpop.eup %1535  ;;  %v697_v60 = vpack.c.bf16 %v685_v0, %v684_v44  ;;  %vm568_vm10 = vmor %vm566_vm9, %vm567_vm8  ;;  %vm596_vm12 = vweird.f32 %v2340_v27 }
 0x1d4   : > { %v562_v8 = vmul.f32 %v1534_v59, %v561_v10  ;;  %v1017_v35 = vpack.c.bf16 %v929_v57, %v880_v28  ;;  %v581_v54 = vmul.f32 %v2348_v42, %v2328_v33  ;;  %v579_v5 = vsel %vm2351_vm7, %v1532_v41, %v575_v16 }
 0x1d5   : > { %893 = vmatmul.bf16.gmra.mxu0 %v697_v60  ;;  %942 = vmatmul.bf16.gmra.mxu1 %v697_v60  ;;  %v2365_v21 = vpop.f32.mrf.mxu3  ;;  %v649_v12 = vmul.f32 %v579_v5, %v2187_v39  ;;  %vm587_vm13 = vweird.f32 %v2348_v42 }
 0x1d6   : > { %v563_v4 = vmul.f32 0.5, %v562_v8  ;;  %1049 = vst [vmem:[%s2361_s28] sm:$0xff] %v1017_v35  ;;  %v582_v25 = vmul.f32 %v2348_v42, %v581_v54  ;;  %991 = vmatmul.bf16.gmra.mxu2 %v697_v60  ;;  %vm2391_vm15 = vmor %vm586_vm11, %vm587_vm13 }
 0x1d7   : > { %v977_v46 = vpop.f32.mrf.mxu2  ;;  %v668_v61 = vmul.f32 %v2178_v19, %v649_v12 }
 0x1d8   : > { %v564_v45 = vsub.f32 1.5, %v563_v4  ;;  %v978_v40 = vadd.f32 %v977_v46, %v2357_v56  ;;  %v881_v36 = vpop.f32.mrf.mxu0  ;;  %v583_v31 = vmul.f32 0.5, %v582_v25 }
 0x1d9   : > { %v1538_v32 = vpop.eup %1537  ;;  %v930_v58 = vpop.f32.mrf.mxu1  ;;  %v882_v26 = vadd.f32 %v881_v36, %v2332_v1  ;;  %v687_v18 = vadd.f32 %v2204_v52, %v668_v61 }
 0x1da   : > { %v565_v50 = vmul.f32 %v1534_v59, %v564_v45  ;;  %v591_v30 = vmul.f32 %v1538_v32, %v2340_v27  ;;  %v1018_v20 = vpack.c.bf16 %v978_v40, %v978_v40  ;;  %v931_v62 = vadd.f32 %v930_v58, %v2334_v48 }
 0x1db   : > { %v584_v41 = vsub.f32 1.5, %v583_v31  ;;  %vm597_vm14 = vweird.f32 %v1538_v32 }
 0x1dc   : > { %v569_v3 = vsel %vm568_vm10, %v1534_v59, %v565_v50  ;;  %v592_v9 = vmul.f32 %v1538_v32, %v591_v30  ;;  %1050 = vst [vmem:[%s2361_s28 + $0x8] sm:$0xf] %v1018_v20  ;;  %v1019_v37 = vpack.c.bf16 %v931_v62, %v882_v26  ;;  %vm598_vm0 = vmor %vm596_vm12, %vm597_vm14  ;;  %v910_v50 = vadd.f32 %v2365_v21, %v2332_v1 }
 0x1dd   : > { %v648_v39 = vmul.f32 %v569_v3, %v2227_v13  ;;  %v2380_v63 = vpop.f32.mrf.mxu3  ;;  %v585_v2 = vmul.f32 %v2348_v42, %v584_v41 }
 0x1de   : > { %v593_v7 = vmul.f32 0.5, %v592_v9  ;;  %1051 = vst [vmem:[%s2361_s28 + $0xc] sm:$0xff] %v1019_v37  ;;  %v912_v61 = vadd.f32 %v2380_v63, %v2332_v1 }
 0x1df   : > { %v667_v6 = vmul.f32 %v2178_v19, %v648_v39  ;;  %v979_v55 = vpop.f32.mrf.mxu2  ;;  %v589_v53 = vsel %vm2391_vm15, %v2348_v42, %v585_v2 }
 0x1e0   : > { %v594_v29 = vsub.f32 1.5, %v593_v7  ;;  %v980_v13 = vadd.f32 %v979_v55, %v2357_v56  ;;  %v884_v34 = vpop.f32.mrf.mxu0  ;;  %v650_v8 = vmul.f32 %v589_v53, %v2234_v23 }
 0x1e1   : > { %v933_v24 = vpop.f32.mrf.mxu1  ;;  %v686_v14 = vadd.f32 %v2204_v52, %v667_v6  ;;  %v885_v47 = vadd.f32 %v884_v34, %v2332_v1 }
 0x1e2   : > { %v595_v15 = vmul.f32 %v1538_v32, %v594_v29  ;;  %v934_v17 = vadd.f32 %v933_v24, %v2334_v48  ;;  %v1020_v11 = vpack.c.bf16 %v980_v13, %v980_v13 }
 0x1e3   : > { %v698_v22 = vpack.c.bf16 %v687_v18, %v686_v14 }
 0x1e4   : > { %v1021_v43 = vpack.c.bf16 %v934_v17, %v885_v47  ;;  %1052 = vst [vmem:[%s2361_s28 + $0x14] sm:$0xf] %v1020_v11  ;;  %v599_v49 = vsel %vm598_vm0, %v1538_v32, %v595_v15 }
 0x1e5   : > { %898 = vmatmul.bf16.gmra.mxu0 %v698_v22  ;;  %947 = vmatmul.bf16.gmra.mxu1 %v698_v22  ;;  %v914_v33 = vpop.f32.mrf.mxu3  ;;  %v651_v28 = vmul.f32 %v599_v49, %v2274_v38  ;;  %v669_v38 = vmul.f32 %v2178_v19, %v650_v8 }
 0x1e6   : > { %1053 = vst [vmem:[%s2361_s28 + $0x18] sm:$0xff] %v1021_v43  ;;  %996 = vmatmul.bf16.gmra.mxu2 %v698_v22  ;;  %v915_v13 = vadd.f32 %v914_v33, %v2332_v1 }
 0x1e7   : > { %v982_v10 = vpop.f32.mrf.mxu2  ;;  %v670_v42 = vmul.f32 %v2178_v19, %v651_v28  ;;  %v688_v12 = vadd.f32 %v2204_v52, %v669_v38 }
 0x1e8   : > { %v983_v57 = vadd.f32 %v982_v10, %v2357_v56  ;;  %v886_v27 = vpop.f32.mrf.mxu0 }
 0x1e9   : > { %v935_v16 = vpop.f32.mrf.mxu1  ;;  %v887_v44 = vadd.f32 %v886_v27, %v2332_v1  ;;  %v689_v25 = vadd.f32 %v2204_v52, %v670_v42 }
 0x1ea   : > { %v936_v0 = vadd.f32 %v935_v16, %v2334_v48  ;;  %v1022_v35 = vpack.c.bf16 %v983_v57, %v983_v57 }
 0x1eb   : > { %v699_v36 = vpack.c.bf16 %v689_v25, %v688_v12 }
 0x1ec   : > { %v1023_v51 = vpack.c.bf16 %v936_v0, %v887_v44  ;;  %1054 = vst [vmem:[%s2361_s28 + $0x20] sm:$0xf] %v1022_v35 }
 0x1ed   : > { %v916_v54 = vpop.f32.mrf.mxu3 }
 0x1ee   : > { %1055 = vst [vmem:[%s2361_s28 + $0x24] sm:$0xff] %v1023_v51  ;;  %v917_v63 = vadd.f32 %v916_v54, %v2332_v1 }
 0x1ef   : > { %v984_v60 = vpop.f32.mrf.mxu2 }
 0x1f0   : > { %v985_v5 = vadd.f32 %v984_v60, %v2357_v56  ;;  %v889_v4 = vpop.f32.mrf.mxu0 }
 0x1f1   : > { %v938_v45 = vpop.f32.mrf.mxu1  ;;  %v890_v23 = vadd.f32 %v889_v4, %v2332_v1 }
 0x1f2   : > { %v939_v46 = vadd.f32 %v938_v45, %v2334_v48  ;;  %v1024_v32 = vpack.c.bf16 %v985_v5, %v985_v5 }
 0x1f4   : > { %v1025_v40 = vpack.c.bf16 %v939_v46, %v890_v23  ;;  %1056 = vst [vmem:[%s2361_s28 + $0x2c] sm:$0xf] %v1024_v32 }
 0x1f5   : > { %903 = vmatmul.bf16.gmra.mxu0 %v699_v36  ;;  %952 = vmatmul.bf16.gmra.mxu1 %v699_v36  ;;  %v958_v19 = vpop.f32.mrf.mxu3 }
 0x1f6   : > { %1057 = vst [vmem:[%s2361_s28 + $0x30] sm:$0xff] %v1025_v40  ;;  %1001 = vmatmul.bf16.gmra.mxu2 %v699_v36  ;;  %v959_v30 = vadd.f32 %v958_v19, %v2334_v48 }
 0x1f7   : > { %v987_v58 = vpop.f32.mrf.mxu2 }
 0x1f8   : > { %v988_v26 = vadd.f32 %v987_v58, %v2357_v56  ;;  %v891_v52 = vpop.f32.mrf.mxu0  ;;  %v1041_v31 = vpack.c.bf16 %v959_v30, %v910_v50 }
 0x1f9   : > { %v940_v20 = vpop.f32.mrf.mxu1  ;;  %v892_v62 = vadd.f32 %v891_v52, %v2332_v1 }
 0x1fa   : > { %v941_v3 = vadd.f32 %v940_v20, %v2334_v48  ;;  %v1026_v9 = vpack.c.bf16 %v988_v26, %v988_v26  ;;  %1073 = vst [vmem:[%s2361_s28 + $0x90] sm:$0xff] %v1041_v31 }
 0x1fc   : > { %v1027_v39 = vpack.c.bf16 %v941_v3, %v892_v62  ;;  %1058 = vst [vmem:[%s2361_s28 + $0x38] sm:$0xf] %v1026_v9 }
 0x1fd   : > { %v960_v21 = vpop.f32.mrf.mxu3 }
 0x1fe   : > { %1059 = vst [vmem:[%s2361_s28 + $0x3c] sm:$0xff] %v1027_v39  ;;  %v961_v7 = vadd.f32 %v960_v21, %v2334_v48 }
 0x1ff   : > { %v989_v37 = vpop.f32.mrf.mxu2 }
 0x200   : > { %v990_v6 = vadd.f32 %v989_v37, %v2357_v56  ;;  %v1043_v41 = vpack.c.bf16 %v961_v7, %v912_v61 }
 0x202   : > { %v1028_v29 = vpack.c.bf16 %v990_v6, %v990_v6  ;;  %1075 = vst [vmem:[%s2361_s28 + $0x9c] sm:$0xff] %v1043_v41 }
 0x204   : > { %1060 = vst [vmem:[%s2361_s28 + $0x44] sm:$0xf] %v1028_v29 }
 0x205   : > { %v963_v55 = vpop.f32.mrf.mxu3 }
 0x206   : > { %v964_v34 = vadd.f32 %v963_v55, %v2334_v48 }
 0x208   : > { %v1045_v24 = vpack.c.bf16 %v964_v34, %v915_v13 }
 0x20a   : > { %1077 = vst [vmem:[%s2361_s28 + $0xa8] sm:$0xff] %v1045_v24 }
 0x20d   : > { %v965_v14 = vpop.f32.mrf.mxu3 }
 0x20e   : > { %v966_v18 = vadd.f32 %v965_v14, %v2334_v48 }
 0x210   : > { %v1047_v15 = vpack.c.bf16 %v966_v18, %v917_v63 }
 0x212   : > { %1079 = vst [vmem:[%s2361_s28 + $0xb4] sm:$0xff] %v1047_v15 }
 0x215   : > { %v1007_v47 = vpop.f32.mrf.mxu3 }
 0x216   : > { %v1008_v17 = vadd.f32 %v1007_v47, %v2357_v56 }
 0x218   : > { %v1042_v11 = vpack.c.bf16 %v1008_v17, %v1008_v17 }
 0x21a   : > { %1074 = vst [vmem:[%s2361_s28 + $0x98] sm:$0xf] %v1042_v11 }
 0x21d   : > { %v1009_v22 = vpop.f32.mrf.mxu3 }
 0x21e   : > { %v1010_v2 = vadd.f32 %v1009_v22, %v2357_v56 }
 0x220   : > { %v1044_v59 = vpack.c.bf16 %v1010_v2, %v1010_v2 }
 0x222   : > { %1076 = vst [vmem:[%s2361_s28 + $0xa4] sm:$0xf] %v1044_v59 }
 0x225   : > { %v1012_v43 = vpop.f32.mrf.mxu3 }
 0x226   : > { %v1013_v49 = vadd.f32 %v1012_v43, %v2357_v56 }
 0x228   : > { %v1046_v53 = vpack.c.bf16 %v1013_v49, %v1013_v49 }
 0x22a   : > { %1078 = vst [vmem:[%s2361_s28 + $0xb0] sm:$0xf] %v1046_v53 }
 0x22d   : > { %v1014_v33 = vpop.f32.mrf.mxu3 }
 0x22e   : > { %v1015_v10 = vadd.f32 %v1014_v33, %v2357_v56 }
 0x230   : > { %v1048_v28 = vpack.c.bf16 %v1015_v10, %v1015_v10 }
 0x232   : > { %1080 = vst [vmem:[%s2361_s28 + $0xbc] sm:$0xf] %v1048_v28 }
 0x252   : > { %v894_v57 = vpop.f32.mrf.mxu0  ;;  %v943_v27 = vpop.f32.mrf.mxu1 }
 0x253   : > { %v895_v16 = vadd.f32 %v894_v57, %v2332_v1  ;;  %v944_v44 = vadd.f32 %v943_v27, %v2334_v48 }
 0x255   : > { %v1029_v0 = vpack.c.bf16 %v944_v44, %v895_v16 }
 0x257   : > { %1061 = vst [vmem:[%s2361_s28 + $0x48] sm:$0xff] %v1029_v0 }
 0x259   : > { %v992_v8 = vpop.f32.mrf.mxu2 }
 0x25a   : > { %v993_v35 = vadd.f32 %v992_v8, %v2357_v56  ;;  %v896_v51 = vpop.f32.mrf.mxu0  ;;  %v945_v42 = vpop.f32.mrf.mxu1 }
 0x25b   : > { %v897_v38 = vadd.f32 %v896_v51, %v2332_v1  ;;  %v946_v54 = vadd.f32 %v945_v42, %v2334_v48 }
 0x25c   : > { %v1030_v60 = vpack.c.bf16 %v993_v35, %v993_v35 }
 0x25d   : > { %v1031_v5 = vpack.c.bf16 %v946_v54, %v897_v38 }
 0x25e   : > { %1062 = vst [vmem:[%s2361_s28 + $0x50] sm:$0xf] %v1030_v60 }
 0x25f   : > { %1063 = vst [vmem:[%s2361_s28 + $0x54] sm:$0xff] %v1031_v5 }
 0x261   : > { %v994_v4 = vpop.f32.mrf.mxu2 }
 0x262   : > { %v995_v45 = vadd.f32 %v994_v4, %v2357_v56  ;;  %v899_v25 = vpop.f32.mrf.mxu0  ;;  %v948_v23 = vpop.f32.mrf.mxu1 }
 0x263   : > { %v900_v46 = vadd.f32 %v899_v25, %v2332_v1  ;;  %v949_v32 = vadd.f32 %v948_v23, %v2334_v48 }
 0x264   : > { %v1032_v12 = vpack.c.bf16 %v995_v45, %v995_v45 }
 0x265   : > { %v1033_v40 = vpack.c.bf16 %v949_v32, %v900_v46 }
 0x266   : > { %1064 = vst [vmem:[%s2361_s28 + $0x5c] sm:$0xf] %v1032_v12 }
 0x267   : > { %1065 = vst [vmem:[%s2361_s28 + $0x60] sm:$0xff] %v1033_v40 }
 0x269   : > { %v997_v36 = vpop.f32.mrf.mxu2 }
 0x26a   : > { %v998_v19 = vadd.f32 %v997_v36, %v2357_v56  ;;  %v901_v58 = vpop.f32.mrf.mxu0  ;;  %v950_v50 = vpop.f32.mrf.mxu1 }
 0x26b   : > { %v902_v30 = vadd.f32 %v901_v58, %v2332_v1  ;;  %v951_v26 = vadd.f32 %v950_v50, %v2334_v48 }
 0x26c   : > { %v1034_v52 = vpack.c.bf16 %v998_v19, %v998_v19 }
 0x26d   : > { %v1035_v20 = vpack.c.bf16 %v951_v26, %v902_v30 }
 0x26e   : > { %1066 = vst [vmem:[%s2361_s28 + $0x68] sm:$0xf] %v1034_v52 }
 0x26f   : > { %1067 = vst [vmem:[%s2361_s28 + $0x6c] sm:$0xff] %v1035_v20 }
 0x271   : > { %v999_v62 = vpop.f32.mrf.mxu2 }
 0x272   : > { %v1000_v3 = vadd.f32 %v999_v62, %v2357_v56  ;;  %v904_v31 = vpop.f32.mrf.mxu0  ;;  %v953_v9 = vpop.f32.mrf.mxu1 }
 0x273   : > { %v905_v39 = vadd.f32 %v904_v31, %v2332_v1  ;;  %v954_v21 = vadd.f32 %v953_v9, %v2334_v48 }
 0x274   : > { %v1036_v37 = vpack.c.bf16 %v1000_v3, %v1000_v3 }
 0x275   : > { %v1037_v61 = vpack.c.bf16 %v954_v21, %v905_v39 }
 0x276   : > { %1068 = vst [vmem:[%s2361_s28 + $0x74] sm:$0xf] %v1036_v37 }
 0x277   : > { %1069 = vst [vmem:[%s2361_s28 + $0x78] sm:$0xff] %v1037_v61 }
 0x279   : > { %v1002_v7 = vpop.f32.mrf.mxu2 }
 0x27a   : > { %v1003_v6 = vadd.f32 %v1002_v7, %v2357_v56  ;;  %v906_v41 = vpop.f32.mrf.mxu0  ;;  %v955_v29 = vpop.f32.mrf.mxu1 }
 0x27b   : > { %v907_v55 = vadd.f32 %v906_v41, %v2332_v1  ;;  %v956_v13 = vadd.f32 %v955_v29, %v2334_v48 }
 0x27c   : > { %v1038_v34 = vpack.c.bf16 %v1003_v6, %v1003_v6 }
 0x27d   : > { %v1039_v24 = vpack.c.bf16 %v956_v13, %v907_v55 }
 0x27e   : > { %1070 = vst [vmem:[%s2361_s28 + $0x80] sm:$0xf] %v1038_v34 }
 0x27f   : > { %1071 = vst [vmem:[%s2361_s28 + $0x84] sm:$0xff] %v1039_v24 }
 0x281   : > { %v1004_v14 = vpop.f32.mrf.mxu2 }
 0x282   : > { %v1005_v63 = vadd.f32 %v1004_v14, %v2357_v56 }
 0x284   : > { %v1040_v1 = vpack.c.bf16 %v1005_v63, %v1005_v63 }
 0x286   : > { %1072 = vst [vmem:[%s2361_s28 + $0x8c] sm:$0xf] %v1040_v1 }
 0x287   : > { %1686 = shalt.err (!%p1683_p13)
}
 0x288   : > { %s1775_s12 = smov 192   ;;  %s1776_s18 = smov 12  }
 0x289   : > { %1401 = dma.vmem_to_hbm [thread:$0]  (%p1911_p3), %s1098_s14, 3072, %s1100_s29, %s1082_s17, %s1775_s12, %s1775_s12, %s1776_s18  }
 0x28a PF: > { %s2566_s23 = sld [smem:[#allocation15_spill]]  ;;  %p1428_p0 = scmp.ge.s32.totalorder %s1765_s25, 2 }
 0x28c   : > { %p1418_p5 = pnand %p1428_p0, %p1866_p6 }
 0x28e   : > { %p1419_p7 = pneg %p1418_p5 }
 0x290   : > { %s1114_s30 = sand.u32 1, %s2566_s23  }
 0x291   : > { %s1115_s6 = scalar_lea.sflag [#allocation4], %s1114_s30 }
 0x292   : > { %1732 = dma.done.wait (%p1419_p7), %s1115_s6, 3072  }
 0x293   : > { %1734 = vsyncadd (%p1419_p7), %s1115_s6, 4294964224  ;;  %s23_s25 = sadd.s32 1, %s1765_s25   ;;  %s2568_s21 = sld [smem:[#allocation16_spill]] }
 0x294   : > { %p20_p9 = scmp.ge.s32.totalorder %s23_s25, 6   ;;  %s2569_s23 = sld [smem:[#allocation18_spill]] }
 0x295   : > { %s2570_s18 = smov %s1741_s19  ;;  %s2571_s19 = smov %s1745_s20 }
 0x296   : > { %s2572_s20 = smov %s1928_s2  ;;  %s2573_s22 = smov %s1761_s24 }
 0x297   : > { %s2574_s24 = smov %s2580_s9  ;;  %22 = sbr.rel (!%p20_p9) target bundleno = 13 (0xd), region = 97 }
 0x29c   :  { %1121 = vsyncpa [#allocation3], 1 }
 0x29d   :  { %1123 = vsyncpa [#allocation3 + $0x1], 1 }
 0x29e   :  { %1124 = vsyncpa [#allocation6], 1 }
 0x29f   :  { %1125 = vsyncpa [#allocation9], 1 }
 0x2a0   :  { %1126 = vsyncpa [#allocation4], 1 }
 0x2a1   :  { %1128 = vsyncpa [#allocation4 + $0x1], 1 }

</bundles_post_ra>
